<compile_context>
chip_gen: v7x
topology: tpu7x:2x2x1
jax: 0.10.0
libtpu: 0.0.40
codegen_flags: <defaults>
</compile_context>

<pallas_src>
import jax
import jax.numpy as jnp
import numpy as np
from jax.experimental import pallas as pl
from jax.experimental.pallas import tpu as pltpu

N_CLASS = 5  # 0-neg, 1-somewhat neg, 2-neutral, 3-somewhat pos, 4-pos


def _round_up(x: int, m: int) -> int:
    return (x + m - 1) // m * m


def _sentiment_kernel(x_ref, w_ref, b_ref, o_ref):
    # One MXU matmul per batch tile: (TB, H) @ (H, C) with f32 accumulation,
    # then an f32 bias add.  The input tile is cast to the (resident) weight's
    # compute dtype in VMEM -- cheap VPU work, NOT an extra HBM pass.
    x = x_ref[...]
    if x.dtype != w_ref.dtype:
        x = x.astype(w_ref.dtype)
    logits = jnp.dot(x, w_ref[...], preferred_element_type=jnp.float32)
    o_ref[...] = (logits + b_ref[...]).astype(o_ref.dtype)


def prepare_sentiment_params(weight, bias, compute_dtype=jnp.bfloat16):
    """One-time parameter prep (do NOT call per forward).

    weight: (C, H) float32  -- PyTorch nn.Linear layout [out_features, in_features]
    bias:   (C,)   float32
    returns (w_t, b2): (H, C) in compute_dtype, (1, C) in float32.
    """
    w_t = jnp.asarray(weight).T.astype(compute_dtype)          # (H, C)
    b2 = jnp.asarray(bias).reshape(1, -1).astype(jnp.float32)  # (1, C)
    return w_t, b2


def _choose_batch_tile(B, H, in_itemsize, out_itemsize, block_b, min_steps):
    """Batch tile: multiple of 8, >= min_steps grid steps when possible,
    capped by block_b and by a double-buffered VMEM budget (v5e-safe)."""
    vmem_budget = 12 * 1024 * 1024          # under v5e's 16 MiB default scoped limit
    out_row = 128 * out_itemsize            # (tb, C) output lane-pads C up to 128 in VMEM
    per_row = 2 * (H * in_itemsize + out_row)   # double-buffered input + output
    tb_vmem = max(8, (vmem_budget // per_row) // 8 * 8)
    tb_steps = _round_up(max(-(-B // min_steps), 8), 8)  # bounds pad waste to <8 rows
    return max(8, min(block_b, tb_vmem, tb_steps))


def sentiment_classifier(embeddings, w_t, b2, *, block_b=2048,
                         out_dtype=jnp.float32, min_steps=4):
    """
    embeddings: (B, H) -- streamed in its NATIVE dtype (no wrapper cast/pad)
    w_t:        (H, C) compute_dtype (from prepare_sentiment_params)
    b2:         (1, C) float32
    returns:    (B, C) out_dtype logits
    """
    B, H = embeddings.shape
    Hw, C = w_t.shape
    assert Hw == H and b2.shape == (1, C)

    in_itemsize = np.dtype(embeddings.dtype).itemsize
    out_itemsize = np.dtype(out_dtype).itemsize
    tb = _choose_batch_tile(B, H, in_itemsize, out_itemsize, block_b, min_steps)
    grid = pl.cdiv(B, tb)   # partial last block handled by masked output write

    cost = pl.CostEstimate(
        flops=2 * B * H * C,
        transcendentals=0,
        bytes_accessed=(B * H * in_itemsize                     # embedding stream
                        + H * C * np.dtype(w_t.dtype).itemsize  # resident weight
                        + C * 4                                 # bias
                        + B * C * out_itemsize),                # logits writeback
    )

    return pl.pallas_call(
        _sentiment_kernel,
        out_shape=jax.ShapeDtypeStruct((B, C), out_dtype),
        grid=(grid,),
        in_specs=[
            pl.BlockSpec((tb, H), lambda i: (i, 0)),   # streamed batch tiles
            pl.BlockSpec((H, C), lambda i: (0, 0)),    # resident weight
            pl.BlockSpec((1, C), lambda i: (0, 0)),    # resident f32 bias
        ],
        out_specs=pl.BlockSpec((tb, C), lambda i: (i, 0)),
        compiler_params=pltpu.CompilerParams(
            dimension_semantics=("parallel",)),        # megacore split on v7x
        cost_estimate=cost,
    )(embeddings, w_t, b2)


if __name__ == "__main__":
    key = jax.random.PRNGKey(0)
    k_emb, k_w, k_b = jax.random.split(key, 3)

    batch = 8
    hidden_size = 32  # config.hidden_size

    # Deterministic synthetic parameters (shapes from nn.Linear(hidden, 5)).
    embeddings = jax.random.normal(k_emb, (batch, hidden_size), dtype=jnp.float32)
    weight = jax.random.normal(k_w, (N_CLASS, hidden_size), dtype=jnp.float32) * 0.05
    bias = jax.random.normal(k_b, (N_CLASS,), dtype=jnp.float32) * 0.05

    # Parameter prep happens once (transpose + bf16 cast out of the hot path).
    w_t, b2 = prepare_sentiment_params(weight, bias)

    logits = sentiment_classifier(embeddings, w_t, b2)
    logits = jax.block_until_ready(logits)

    # Reference check in plain JAX (same math as torch: x @ W.T + b).
    ref = embeddings @ weight.T + bias
    assert logits.shape == (batch, N_CLASS)
    # bf16 compute dtype for the head weight: loose tolerance vs f32 reference.
    assert jnp.allclose(logits, ref, atol=5e-2, rtol=5e-2)

    print("KERNEL_OK")
</pallas_src>

<mosaic_0001>
module attributes {stable_mosaic.version = 11 : i64} {
  func.func @_sentiment_kernel(%arg0: i32, %arg1: memref<8x32xf32, #tpu.memory_space<vmem>>, %arg2: memref<32x5xbf16, #tpu.memory_space<vmem>>, %arg3: memref<1x5xf32, #tpu.memory_space<vmem>>, %arg4: memref<8x5xf32, #tpu.memory_space<vmem>>) attributes {dimension_semantics = [#tpu.dimension_semantics<parallel>], iteration_bounds = array<i64: 1>, scalar_prefetch = 0 : i64, scratch_operands = 0 : i64, tpu.core_type = #tpu.core_type<tc>, window_params = [{transform_indices = @transform_0, window_bounds = array<i64: 8, 32>}, {pipeline_mode = #tpu.pipeline_mode<synchronous>, transform_indices = @transform_1, window_bounds = array<i64: 32, 5>}, {pipeline_mode = #tpu.pipeline_mode<synchronous>, transform_indices = @transform_2, window_bounds = array<i64: 1, 5>}, {transform_indices = @transform_3, window_bounds = array<i64: 8, 5>}]} {
    %c0 = arith.constant 0 : index
    %c0_0 = arith.constant 0 : index
    %0 = vector.load %arg1[%c0, %c0_0] : memref<8x32xf32, #tpu.memory_space<vmem>>, vector<8x32xf32>
    %1 = arith.truncf %0 : vector<8x32xf32> to vector<8x32xbf16>
    %c0_1 = arith.constant 0 : index
    %c0_2 = arith.constant 0 : index
    %2 = vector.load %arg2[%c0_1, %c0_2] : memref<32x5xbf16, #tpu.memory_space<vmem>>, vector<32x5xbf16>
    %cst = arith.constant dense<0.000000e+00> : vector<8x5xf32>
    %3 = tpu.matmul %1, %2, %cst {dimension_numbers = #tpu.dot_dimension_numbers<[1], [0], [0], [1], [0, 0, 1, 1], [], []>} : vector<8x32xbf16>, vector<32x5xbf16>, vector<8x5xf32> -> vector<8x5xf32>
    %c0_3 = arith.constant 0 : index
    %c0_4 = arith.constant 0 : index
    %4 = vector.load %arg3[%c0_3, %c0_4] : memref<1x5xf32, #tpu.memory_space<vmem>>, vector<1x5xf32>
    %5 = vector.broadcast %4 : vector<1x5xf32> to vector<8x5xf32>
    %6 = arith.addf %3, %5 : vector<8x5xf32>
    %c0_5 = arith.constant 0 : index
    %c0_6 = arith.constant 0 : index
    %7 = vector.load %arg4[%c0_5, %c0_6] : memref<8x5xf32, #tpu.memory_space<vmem>>, vector<8x5xf32>
    tpu.vector_store %arg4[%c0_5, %c0_6], %6 {strides = array<i32>} : memref<8x5xf32, #tpu.memory_space<vmem>>, vector<8x5xf32>,
    return
  }
  func.func @transform_0(%arg0: i32) -> (i32, i32) {
    %c0_i32 = arith.constant 0 : i32
    %c0_i32_0 = arith.constant 0 : i32
    return %arg0, %c0_i32 : i32, i32
  }
  func.func @transform_1(%arg0: i32) -> (i32, i32) {
    %c0_i32 = arith.constant 0 : i32
    %c0_i32_0 = arith.constant 0 : i32
    %c0_i32_1 = arith.constant 0 : i32
    return %c0_i32, %c0_i32_0 : i32, i32
  }
  func.func @transform_2(%arg0: i32) -> (i32, i32) {
    %c0_i32 = arith.constant 0 : i32
    %c0_i32_0 = arith.constant 0 : i32
    %c0_i32_1 = arith.constant 0 : i32
    return %c0_i32, %c0_i32_0 : i32, i32
  }
  func.func @transform_3(%arg0: i32) -> (i32, i32) {
    %c0_i32 = arith.constant 0 : i32
    %c0_i32_0 = arith.constant 0 : i32
    return %arg0, %c0_i32 : i32, i32
  }
}

</mosaic_0001>

<bundles_post_ra>
// kernel: tpu_custom_call.1
= control target key start
LH: loop header
LB: loop body
LE: loop exit
PB: predicated region body
PF: predicated region fallthrough
CT: control target
= control target key end

     0   :  { %v145_v1 = vmov 0.0   ;;  %vm146_vm0 = vmmov 0   ;;  %s192_s0 = inlined_call_operand.vmem [shape: f32[8,32], index: 0, kind: input, shape index: {}]   ;;  %s193_s1 = inlined_call_operand.vmem [shape: bf16[32,5], index: 1, kind: input, shape index: {}]   ;;  %s194_s2 = inlined_call_operand.vmem [shape: f32[1,5], index: 2, kind: input, shape index: {}]   ;;  %s195_s3 = inlined_call_operand.hbm [shape: f32[8,5], index: 3, kind: output, shape index: {}]  }
   0x1   :  { %v119_v0 = vld [vmem:[%s193_s1] sm:$0xff]   ;;  %108 = vmatprep.subr.bf16.mxu0 %v145_v1  ;;  %v120_v2 = vld [vmem:[%s193_s1 + $0x8] sm:$0xff]   ;;  %112 = vmatprep.mubr.msk.bf16.mxu0 %vm146_vm0, %v145_v1 }
   0x2   :  { %109 = vmatpush3.bf16.msra.mxu0 %v119_v0  ;;  %v16_v3 = vld [vmem:[%s192_s0] sm:$0xff] }
   0x3   :  { %8 = vsyncpa [#allocation3], 0  ;;  %110 = vmatprep.subr.bf16.mxu0 %v145_v1  ;;  %v17_v4 = vpack.c.bf16 %v16_v3, %v16_v3  ;;  %vm41_vm1 = vcmask 261120   ;;  %v101_v5 = vld [vmem:[%s194_s2] ss:$0 sm:$0xff]  ;;  %s147_s20 = smov [#allocation2]  }
   0x4   :  { %s93_s21 = sshll.u32 %s147_s20, 4  ;;  %vm85_vm2 = vcmask 39936   ;;  %s94_s21 = int_to_ptr.vmem [resolvable:$true] %s93_s21 }
   0x5   :  { %s121_s0 = scalar_lea.vmem %s94_s21, 128  ;;  %p126_p1 = scmp.lt.s32.totalorder %s94_s21, %s94_s21 }
   0x6   :  { %111 = vmatpush3.bf16.msra.mxu0 %v120_v2  ;;  %p122_p0 = scmp.ne.s32.totalorder %s94_s21, %s121_s0  ;;  %p127_p2 = scmp.lt.s32.totalorder %s121_s0, %s121_s0 }
   0x8   :  { %p128_p3 = por %p127_p2, %p126_p1 }
   0x9   :  { %113 = vmatmul.mubr.msk.bf16.vlgmr.msra.gmra.mrb[0].mxu0 %vm41_vm1, %v17_v4 }
   0xa   :  { %p129_p4 = pnand %p128_p3, %p122_p0 }
  0xdc   :  { %v79_v6 = vpop.f32.mrb[0].mxu0 }
  0xdd   :  { %v80_v7 = vadd.f32 %v101_v5, %v79_v6  ;;  %v114_v8 = vpop.f32.mrb[1].mxu0 }
  0xde   :  { %v82_v9 = vpop.f32.mrb[2].mxu0 }
  0xdf   :  { %v115_v10 = vpop.f32.mrb[3].mxu0  ;;  %86 = vst.msk [vmem:[#allocation2] sm:$0xff] %vm85_vm2, %v80_v7 }
  0xe0   :  { %132 = shalt.err (!%p129_p4)
}
  0xe1   :  { %s133_s2 = scalar_lea.hbm %s195_s3, 128 }
  0xe2   :  { %p134_p5 = scmp.ne.s32.totalorder %s195_s3, %s133_s2  ;;  %p137_p6 = scmp.lt.u32.totalorder %s133_s2, %s195_s3 }
  0xe4   :  { %p139_p7 = pnand %p137_p6, %p134_p5 }
  0xe6   :  { %142 = shalt.err (!%p139_p7)
}
  0xe7   :  { %96 = dma.vmem_to_hbm [thread:$0]  %s94_s21, 128, %s195_s3, [#allocation3]  }
  0xe8   :  { %143 = dma.done.wait [#allocation3], 128  }
  0xe9   :  { %144 = vsyncadd [#allocation3], 4294967168 }
  0xea   :  { %100 = vsyncpa [#allocation3], 1 }

</bundles_post_ra>
